<compile_context>
chip_gen: v7x
topology: tpu7x:2x2x1
jax: 0.10.0
libtpu: 0.0.40
codegen_flags: <defaults>
</compile_context>

<pallas_src>
import functools

import jax
import jax.numpy as jnp
from jax.experimental import pallas as pl
from jax.experimental.pallas import tpu as pltpu

SUBLANE = 8     # sublane granularity for row tiles


def _round_up(x, m):
    return ((x + m - 1) // m) * m


def fused_mlp_kernel(*refs, layer_cfg):
    """Fused MLPResidual forward for one row-tile.

    refs = (x_ref, w0_ref, b0_ref, w1_ref, b1_ref, ..., o_ref), natural widths.
    layer_cfg: static tuple of (use_relu, double_residual) per layer.
    Everything (matmul accumulate + epilogue) runs in f32.
    """
    x_ref = refs[0]
    o_ref = refs[-1]
    wb = refs[1:-1]

    h = x_ref[...]                                          # (TILE_N, dims[0]) f32
    for li, (use_relu, double_residual) in enumerate(layer_cfg):
        w_ref = wb[2 * li]                                  # (Din, Dout)
        b_ref = wb[2 * li + 1]                              # (1, Dout)
        z = jnp.dot(h, w_ref[...], preferred_element_type=jnp.float32)
        z = z + b_ref[...]                                  # broadcast once per tile
        if use_relu:
            z = jnp.maximum(z, 0.0)
        if double_residual:
            # inner block residual (x + f(x)) plus outer forward residual (+ x)
            z = z + 2.0 * h
        h = z
    o_ref[...] = h.astype(o_ref.dtype)


def mlp_residual_forward(batch, params, dims, use_relu=True,
                         skip_last_layer_relu_bn=True, max_tile_n=1024):
    """batch: (N, C) or (N, C, 1, 1).  params: list of (w(out,in), b(out,)) f32."""
    # glue: flatten 4D NxCx1x1 -> NxC, exactly as the PyTorch forward does
    if batch.ndim > 2:
        assert all(d == 1 for d in batch.shape[2:]), (
            f"expected NxCx1x1, got {batch.shape}")
        batch = batch.reshape(batch.shape[0], batch.shape[1])
    N, Din = batch.shape
    assert Din == dims[0]
    n_layers = len(dims) - 1

    # ---- wrapper-side weight prep: transpose (out,in)->(in,out), bias as row ----
    wts, bss, layer_cfg = [], [], []
    for i, (w, b) in enumerate(params):
        wts.append(jnp.asarray(w, jnp.float32).T)                      # (Din, Dout)
        bss.append(jnp.asarray(b, jnp.float32).reshape(1, dims[i + 1]))
        keep = not (i == n_layers - 1 and skip_last_layer_relu_bn)
        layer_cfg.append((use_relu and keep, dims[i] == dims[i + 1]))

    # ---- batch tiling: big row tile, rows padded only if not divisible ----
    x = batch.astype(jnp.float32)
    tile_n = min(_round_up(max_tile_n, SUBLANE), _round_up(N, SUBLANE))
    n_pad = _round_up(N, tile_n)
    if n_pad != N:
        x = jnp.pad(x, ((0, n_pad - N), (0, 0)))

    grid = (n_pad // tile_n,)
    in_specs = [pl.BlockSpec((tile_n, dims[0]), lambda i: (i, 0))]
    args = [x]
    for li in range(n_layers):
        # weights/bias are grid-invariant blocks: DMA'd once, resident in VMEM
        in_specs.append(pl.BlockSpec((dims[li], dims[li + 1]), lambda i: (0, 0)))
        in_specs.append(pl.BlockSpec((1, dims[li + 1]), lambda i: (0, 0)))
        args.append(wts[li])
        args.append(bss[li])

    kernel = functools.partial(fused_mlp_kernel, layer_cfg=tuple(layer_cfg))
    out = pl.pallas_call(
        kernel,
        out_shape=jax.ShapeDtypeStruct((n_pad, dims[-1]), jnp.float32),
        grid=grid,
        in_specs=in_specs,
        out_specs=pl.BlockSpec((tile_n, dims[-1]), lambda i: (i, 0)),
        compiler_params=pltpu.CompilerParams(
            dimension_semantics=("parallel",)),   # shards row tiles on v7x's 2 TCs
    )(*args)
    return out[:N] if n_pad != N else out


def init_params(key, dims, params_multiplier=1.0):
    """Deterministic nn.Linear-style init (uniform +-1/sqrt(fan_in)),
    then scaled by HEAD.PARAMS_MULTIPLIER as in scale_weights()."""
    params = []
    last = dims[0]
    for dim in dims[1:]:
        key, kw, kb = jax.random.split(key, 3)
        bound = 1.0 / (last ** 0.5)
        w = jax.random.uniform(kw, (dim, last), jnp.float32, -bound, bound)
        b = jax.random.uniform(kb, (dim,), jnp.float32, -bound, bound)
        params.append((w * params_multiplier, b * params_multiplier))
        last = dim
    return params


def mlp_residual_reference(batch, params, dims, use_relu=True,
                           skip_last_layer_relu_bn=True):
    """Pure-JAX reference mirroring the PyTorch forward exactly."""
    if batch.ndim > 2:
        batch = batch.reshape(batch.shape[0], batch.shape[1])
    x = batch
    n_layers = len(dims) - 1
    for i, (w, b) in enumerate(params):
        keep = not (i == n_layers - 1 and skip_last_layer_relu_bn)
        z = x @ w.T + b
        if use_relu and keep:
            z = jnp.maximum(z, 0.0)
        if dims[i] == dims[i + 1]:
            z = z + x          # inner block residual
        if z.shape == x.shape:
            z = z + x          # outer forward residual
        x = z
    return x


if __name__ == "__main__":
    key = jax.random.PRNGKey(0)
    dims = [32, 32, 16]        # Linear(32->32, residual+ReLU), Linear(32->16)
    kx, kx2, kx3, kp = jax.random.split(key, 4)
    params = init_params(kp, dims, params_multiplier=1.0)

    # Case 1: tiny 4D input N x C x 1 x 1 (the shape the PyTorch forward accepts)
    x_small = jax.random.normal(kx, (8, dims[0], 1, 1), dtype=jnp.float32)
    out_small = jax.block_until_ready(
        mlp_residual_forward(x_small, params, dims, use_relu=True))
    ref_small = mlp_residual_reference(x_small, params, dims, use_relu=True)
    assert out_small.shape == (8, dims[-1])
    assert jnp.allclose(out_small, ref_small, atol=1e-5, rtol=1e-5)

    # Case 2: larger 2D batch exercising the gridded, pipelined path (4 tiles)
    x_big = jax.random.normal(kx2, (1024, dims[0]), dtype=jnp.float32)
    out_big = jax.block_until_ready(
        mlp_residual_forward(x_big, params, dims, use_relu=True, max_tile_n=256))
    ref_big = mlp_residual_reference(x_big, params, dims, use_relu=True)
    assert out_big.shape == (1024, dims[-1])
    assert jnp.allclose(out_big, ref_big, atol=1e-4, rtol=1e-4)

    # Case 3: ragged batch (not a multiple of the row tile) -> row-pad path
    x_ragged = jax.random.normal(kx3, (1000, dims[0]), dtype=jnp.float32)
    out_ragged = jax.block_until_ready(
        mlp_residual_forward(x_ragged, params, dims, use_relu=True,
                             max_tile_n=256))
    ref_ragged = mlp_residual_reference(x_ragged, params, dims, use_relu=True)
    assert out_ragged.shape == (1000, dims[-1])
    assert jnp.allclose(out_ragged, ref_ragged, atol=1e-4, rtol=1e-4)

    # TODO(synk): BatchNorm1d / train-mode Dropout are disabled in this config
    # (use_bn=False, use_dropout=False); inference-mode Dropout is identity.
    print("KERNEL_OK")
</pallas_src>

<mosaic_0001>
module attributes {stable_mosaic.version = 11 : i64} {
  func.func @fused_mlp_kernel(%arg0: i32, %arg1: memref<8x32xf32, #tpu.memory_space<vmem>>, %arg2: memref<32x32xf32, #tpu.memory_space<vmem>>, %arg3: memref<1x32xf32, #tpu.memory_space<vmem>>, %arg4: memref<32x16xf32, #tpu.memory_space<vmem>>, %arg5: memref<1x16xf32, #tpu.memory_space<vmem>>, %arg6: memref<8x16xf32, #tpu.memory_space<vmem>>) attributes {dimension_semantics = [#tpu.dimension_semantics<parallel>], iteration_bounds = array<i64: 1>, scalar_prefetch = 0 : i64, scratch_operands = 0 : i64, tpu.core_type = #tpu.core_type<tc>, window_params = [{transform_indices = @transform_0, window_bounds = array<i64: 8, 32>}, {pipeline_mode = #tpu.pipeline_mode<synchronous>, transform_indices = @transform_1, window_bounds = array<i64: 32, 32>}, {pipeline_mode = #tpu.pipeline_mode<synchronous>, transform_indices = @transform_2, window_bounds = array<i64: 1, 32>}, {pipeline_mode = #tpu.pipeline_mode<synchronous>, transform_indices = @transform_3, window_bounds = array<i64: 32, 16>}, {pipeline_mode = #tpu.pipeline_mode<synchronous>, transform_indices = @transform_4, window_bounds = array<i64: 1, 16>}, {transform_indices = @transform_5, window_bounds = array<i64: 8, 16>}]} {
    %c0 = arith.constant 0 : index
    %c0_0 = arith.constant 0 : index
    %0 = vector.load %arg1[%c0, %c0_0] : memref<8x32xf32, #tpu.memory_space<vmem>>, vector<8x32xf32>
    %c0_1 = arith.constant 0 : index
    %c0_2 = arith.constant 0 : index
    %1 = vector.load %arg2[%c0_1, %c0_2] : memref<32x32xf32, #tpu.memory_space<vmem>>, vector<32x32xf32>
    %cst = arith.constant dense<0.000000e+00> : vector<8x32xf32>
    %2 = tpu.matmul %0, %1, %cst {dimension_numbers = #tpu.dot_dimension_numbers<[1], [0], [0], [1], [0, 0, 1, 1], [], []>} : vector<8x32xf32>, vector<32x32xf32>, vector<8x32xf32> -> vector<8x32xf32>
    %c0_3 = arith.constant 0 : index
    %c0_4 = arith.constant 0 : index
    %3 = vector.load %arg3[%c0_3, %c0_4] : memref<1x32xf32, #tpu.memory_space<vmem>>, vector<1x32xf32>
    %4 = vector.broadcast %3 : vector<1x32xf32> to vector<8x32xf32>
    %5 = arith.addf %2, %4 : vector<8x32xf32>
    %cst_5 = arith.constant 0.000000e+00 : f32
    %6 = vector.broadcast %cst_5 : f32 to vector<8x32xf32>
    %7 = arith.maximumf %5, %6 : vector<8x32xf32>
    %cst_6 = arith.constant 2.000000e+00 : f32
    %8 = vector.broadcast %cst_6 : f32 to vector<8x32xf32>
    %9 = arith.mulf %8, %0 : vector<8x32xf32>
    %10 = arith.addf %7, %9 : vector<8x32xf32>
    %c0_7 = arith.constant 0 : index
    %c0_8 = arith.constant 0 : index
    %11 = vector.load %arg4[%c0_7, %c0_8] : memref<32x16xf32, #tpu.memory_space<vmem>>, vector<32x16xf32>
    %cst_9 = arith.constant dense<0.000000e+00> : vector<8x16xf32>
    %12 = tpu.matmul %10, %11, %cst_9 {dimension_numbers = #tpu.dot_dimension_numbers<[1], [0], [0], [1], [0, 0, 1, 1], [], []>} : vector<8x32xf32>, vector<32x16xf32>, vector<8x16xf32> -> vector<8x16xf32>
    %c0_10 = arith.constant 0 : index
    %c0_11 = arith.constant 0 : index
    %13 = vector.load %arg5[%c0_10, %c0_11] : memref<1x16xf32, #tpu.memory_space<vmem>>, vector<1x16xf32>
    %14 = vector.broadcast %13 : vector<1x16xf32> to vector<8x16xf32>
    %15 = arith.addf %12, %14 : vector<8x16xf32>
    %c0_12 = arith.constant 0 : index
    %c0_13 = arith.constant 0 : index
    %16 = vector.load %arg6[%c0_12, %c0_13] : memref<8x16xf32, #tpu.memory_space<vmem>>, vector<8x16xf32>
    tpu.vector_store %arg6[%c0_12, %c0_13], %15 {strides = array<i32>} : memref<8x16xf32, #tpu.memory_space<vmem>>, vector<8x16xf32>,
    return
  }
  func.func @transform_0(%arg0: i32) -> (i32, i32) {
    %c0_i32 = arith.constant 0 : i32
    %c0_i32_0 = arith.constant 0 : i32
    return %arg0, %c0_i32 : i32, i32
  }
  func.func @transform_1(%arg0: i32) -> (i32, i32) {
    %c0_i32 = arith.constant 0 : i32
    %c0_i32_0 = arith.constant 0 : i32
    %c0_i32_1 = arith.constant 0 : i32
    return %c0_i32, %c0_i32_0 : i32, i32
  }
  func.func @transform_2(%arg0: i32) -> (i32, i32) {
    %c0_i32 = arith.constant 0 : i32
    %c0_i32_0 = arith.constant 0 : i32
    %c0_i32_1 = arith.constant 0 : i32
    return %c0_i32, %c0_i32_0 : i32, i32
  }
  func.func @transform_3(%arg0: i32) -> (i32, i32) {
    %c0_i32 = arith.constant 0 : i32
    %c0_i32_0 = arith.constant 0 : i32
    %c0_i32_1 = arith.constant 0 : i32
    return %c0_i32, %c0_i32_0 : i32, i32
  }
  func.func @transform_4(%arg0: i32) -> (i32, i32) {
    %c0_i32 = arith.constant 0 : i32
    %c0_i32_0 = arith.constant 0 : i32
    %c0_i32_1 = arith.constant 0 : i32
    return %c0_i32, %c0_i32_0 : i32, i32
  }
  func.func @transform_5(%arg0: i32) -> (i32, i32) {
    %c0_i32 = arith.constant 0 : i32
    %c0_i32_0 = arith.constant 0 : i32
    return %arg0, %c0_i32 : i32, i32
  }
}

</mosaic_0001>

<bundles_post_ra>
// kernel: tpu_custom_call.1
= control target key start
LH: loop header
LB: loop body
LE: loop exit
PB: predicated region body
PF: predicated region fallthrough
CT: control target
= control target key end

     0   :  { %v286_v3 = vmov 0.0|0.0   ;;  %vm287_vm0 = vmmov 0   ;;  %v288_v6 = vmov 0.0   ;;  %s367_s0 = inlined_call_operand.vmem [shape: f32[8,32], index: 0, kind: input, shape index: {}]   ;;  %s368_s1 = inlined_call_operand.vmem [shape: f32[32,32], index: 1, kind: input, shape index: {}]   ;;  %s369_s2 = inlined_call_operand.vmem [shape: f32[1,32], index: 2, kind: input, shape index: {}]   ;;  %s370_s3 = inlined_call_operand.vmem [shape: f32[32,16], index: 3, kind: input, shape index: {}]   ;;  %s371_s4 = inlined_call_operand.vmem [shape: f32[1,16], index: 4, kind: input, shape index: {}]   ;;  %s372_s5 = inlined_call_operand.hbm [shape: f32[8,16], index: 5, kind: output, shape index: {}]  }
   0x1   :  { %v22_v0 = vld [vmem:[%s368_s1] sm:$0xff]  ;;  %v23_v1 = vld [vmem:[%s368_s1 + $0x8] sm:$0xff]  ;;  %v24_v2 = vld [vmem:[%s368_s1 + $0x10] sm:$0xff]  ;;  %246 = vmatprep.subr.bf16.mxu0 %v286_v3  ;;  %232 = vmatprep.mubr.msk.f32.mxu0 %vm287_vm0, %v288_v6 }
   0x2   :  { %v247_v4 = vpack.c.bf16 %v23_v1, %v22_v0  ;;  %v25_v5 = vld [vmem:[%s368_s1 + $0x18] sm:$0xff]  ;;  %252 = vmatprep.subr.bf16.mxu1 %v286_v3  ;;  %243 = vmatprep.mubr.msk.f32.mxu1 %vm287_vm0, %v288_v6 }
   0x3   :  { %10 = vsyncpa [#allocation3], 0  ;;  %v250_v7 = vpack.c.bf16 %v25_v5, %v24_v2  ;;  %v21_v8 = vld [vmem:[%s367_s0] sm:$0xff]  ;;  %vm33_vm1 = vcmask 261120   ;;  %v111_v10 = vld [vmem:[%s370_s3 + $0x8] sm:$0xff]  ;;  %s289_s13 = smov [#allocation2]  }
   0x4   :  { %248 = vmatpush3.bf16.msra.mxu0 %v247_v4  ;;  %v110_v9 = vld [vmem:[%s370_s3] sm:$0xff]  ;;  %v112_v12 = vld [vmem:[%s370_s3 + $0x10] sm:$0xff]  ;;  %v113_v13 = vld [vmem:[%s370_s3 + $0x18] sm:$0xff]  ;;  %v108_v17 = vmul.f32 2.0, %v21_v8  ;;  %s202_s3 = sshll.u32 %s289_s13, 4  ;;  %vm194_vm2 = vcmask 130048   ;;  %s203_s3 = int_to_ptr.vmem [resolvable:$true] %s202_s3 }
   0x5   :  { %249 = vmatprep.subr.bf16.mxu0 %v286_v3  ;;  %v253_v11 = vpack.c.bf16 %v111_v10, %v110_v9  ;;  %v256_v14 = vpack.c.bf16 %v113_v13, %v112_v12  ;;  %v210_v15 = vld [vmem:[%s369_s2] ss:$0 sm:$0xff]  ;;  %s262_s2 = scalar_lea.vmem %s203_s3, 128  ;;  %p267_p1 = scmp.lt.s32.totalorder %s203_s3, %s203_s3 }
   0x6   :  { %v212_v22 = vld [vmem:[%s371_s4] ss:$0 sm:$0xff]  ;;  %p263_p0 = scmp.ne.s32.totalorder %s203_s3, %s262_s2  ;;  %p268_p2 = scmp.lt.s32.totalorder %s262_s2, %s262_s2 }
   0x7   :  { %254 = vmatpush3.bf16.msra.mxu1 %v253_v11 }
   0x8   :  { %251 = vmatpush3.bf16.msra.mxu0 %v250_v7  ;;  %255 = vmatprep.subr.bf16.mxu1 %v286_v3  ;;  %p269_p3 = por %p268_p2, %p267_p1 }
   0xa   :  { %p270_p4 = pnand %p269_p3, %p263_p0 }
   0xb   :  { %233 = vmatmul.mubr.msk.f32.vlgmr.msra.gmra.mrb[0].mxu0 %vm33_vm1, %v21_v8  ;;  %257 = vmatpush3.bf16.msra.mxu1 %v256_v14 }
  0xde   :  { %v103_v16 = vpop.f32.mrb[0].mxu0 }
  0xdf   :  { %v104_v18 = vadd.f32 %v210_v15, %v103_v16  ;;  %v234_v19 = vpop.f32.mrb[1].mxu0 }
  0xe1   :  { %v107_v20 = vmax.f32 %v104_v18, 0.0 }
  0xe3   :  { %v109_v21 = vadd.f32 %v108_v17, %v107_v20 }
  0xe5   :  { %244 = vmatmul.mubr.msk.f32.vlgmr.msra.gmra.mrb[0].mxu1 %vm33_vm1, %v109_v21 }
 0x1b8   :  { %v190_v23 = vpop.f32.mrb[0].mxu1 }
 0x1b9   :  { %v191_v24 = vadd.f32 %v212_v22, %v190_v23  ;;  %v245_v25 = vpop.f32.mrb[1].mxu1 }
 0x1bb   :  { %195 = vst.msk [vmem:[#allocation2] sm:$0xff] %vm194_vm2, %v191_v24 }
 0x1bc   :  { %273 = shalt.err (!%p270_p4)
}
 0x1bd   :  { %s274_s16 = scalar_lea.hbm %s372_s5, 128 }
 0x1be   :  { %p275_p5 = scmp.ne.s32.totalorder %s372_s5, %s274_s16  ;;  %p278_p6 = scmp.lt.u32.totalorder %s274_s16, %s372_s5 }
 0x1c0   :  { %p280_p7 = pnand %p278_p6, %p275_p5 }
 0x1c2   :  { %283 = shalt.err (!%p280_p7)
}
 0x1c3   :  { %205 = dma.vmem_to_hbm [thread:$0]  %s203_s3, 128, %s372_s5, [#allocation3]  }
 0x1c4   :  { %284 = dma.done.wait [#allocation3], 128  }
 0x1c5   :  { %285 = vsyncadd [#allocation3], 4294967168 }
 0x1c6   :  { %209 = vsyncpa [#allocation3], 1 }

</bundles_post_ra>
